<compile_context>
chip_gen: v7x
topology: tpu7x:2x2x1
jax: 0.10.0
libtpu: 0.0.40
codegen_flags: <defaults>
</compile_context>

<pallas_src>
import functools

import jax
import jax.numpy as jnp
from jax.experimental import pallas as pl
from jax.experimental.pallas import tpu as pltpu

DIM_Z1 = 12
DIM_Z2 = 12
DIM_IN = DIM_Z1 + DIM_Z2                       # 24  (also the output width)
N_F1 = DIM_Z1                                  # 12
N_G1 = DIM_Z1 * DIM_Z2                         # 144
N_F2 = DIM_Z2                                  # 12
N_G2 = DIM_Z2 * DIM_Z2                         # 144
DIM_OUT_CGN = N_F1 + N_G1 + N_F2 + N_G2        # 312

DIM_K_PAD = 16                                 # z1 block padded 12 -> 16 (sublane aligned)
DIM_FEATS = DIM_IN + DIM_Z2 * DIM_K_PAD        # 24 + 192 = 216


def _round_up(x, m):
    return (x + m - 1) // m * m


def _fuse_cgn_params(w, b):
    """Fold cgn.net = Linear(12 -> 312) into a single (24, 216) map + (24, 1) bias.

    The fused map acts on features [z1 (12) | z2 (12) | for j: z2[j] * x[:16] (16)]
    in the transposed (features-on-sublanes, batch-on-lanes) layout:
      z1_dot[i] = b[i]     + W_f1[i,:] @ z1 + b_g1[i,:] @ z2 + z2^T W_g1[i] z1
      z2_dot[i] = b[156+i] + W_f2[i,:] @ z1 + b_g2[i,:] @ z2 + z2^T W_g2[i] z1
    Rows 12..15 of each padded product block get zero weight columns.
    """
    w = w.astype(jnp.float32)
    b = b.astype(jnp.float32)
    w_f1 = w[:N_F1]                                                    # (12, 12)
    w_g1 = w[N_F1:N_F1 + N_G1].reshape(DIM_Z1, DIM_Z2, DIM_Z1)         # [i, j, k]
    w_f2 = w[N_F1 + N_G1:N_F1 + N_G1 + N_F2]                           # (12, 12)
    w_g2 = w[N_F1 + N_G1 + N_F2:].reshape(DIM_Z2, DIM_Z2, DIM_Z1)      # [i, j, k]
    b_f1 = b[:N_F1]
    b_g1 = b[N_F1:N_F1 + N_G1].reshape(DIM_Z1, DIM_Z2)                 # [i, j]
    b_f2 = b[N_F1 + N_G1:N_F1 + N_G1 + N_F2]
    b_g2 = b[N_F1 + N_G1 + N_F2:].reshape(DIM_Z2, DIM_Z2)              # [i, j]

    w_z1 = jnp.concatenate([w_f1, w_f2], axis=0)                       # (24, 12) coeff of z1[k]
    w_z2 = jnp.concatenate([b_g1, b_g2], axis=0)                       # (24, 12) coeff of z2[j]
    w_g = jnp.concatenate([w_g1, w_g2], axis=0)                        # (24, 12, 12) [o, j, k]
    w_g = jnp.pad(w_g, ((0, 0), (0, 0), (0, DIM_K_PAD - DIM_Z1)))      # (24, 12, 16)
    w_p = w_g.reshape(DIM_IN, DIM_Z2 * DIM_K_PAD)                      # (24, 192) coeff of z2[j]*z1[k]

    w_fused = jnp.concatenate([w_z1, w_z2, w_p], axis=1)               # (24, 216)
    b_fused = jnp.concatenate([b_f1, b_f2], axis=0).reshape(DIM_IN, 1) # (24, 1)
    return w_fused, b_fused


def cgkn_kernel(x_ref, wf_ref, bf_ref, o_ref):
    """One batch tile in the transposed (lane-dense) layout.

    x_ref : (24, TB)  f32   u^T block: rows 0..11 = z1, rows 12..23 = z2
    wf_ref: (24, 216) f32   fused weight (resident across grid steps)
    bf_ref: (24, 1)   f32   fused bias
    o_ref : (24, TB)  f32   [z1_dot ; z2_dot]^T block
    """
    x = x_ref[...]                                      # (24, TB)
    z1p = x[:DIM_K_PAD, :]                              # (16, TB): [z1 ; z2[0:4]] (tail zero-weighted)

    # Kronecker features z2[j] * z1 via sublane broadcasts (VPU only); every
    # concat offset is a multiple of 8 sublanes thanks to the 16-row padding.
    pieces = [x]
    for j in range(DIM_Z2):
        z2_j = x[DIM_Z1 + j:DIM_Z1 + j + 1, :]          # (1, TB)
        pieces.append(z2_j * z1p)                       # (16, TB)
    feats = jnp.concatenate(pieces, axis=0)             # (216, TB)

    # One MXU matmul (K=216) does the whole forward — replaces the 24 unrolled
    # cross-lane reductions + single-lane concatenates of the previous version.
    out = jnp.dot(wf_ref[...], feats,
                  preferred_element_type=jnp.float32,
                  precision=jax.lax.Precision.HIGHEST)  # (24, TB)
    o_ref[...] = (out + bf_ref[...]).astype(o_ref.dtype)


@functools.partial(jax.jit, static_argnames=("tile_b",))
def cgkn_forward(t, u_extended, w, b, *, tile_b=1024):
    """CGKN.forward(t, u_extended) -> (B, 24).  `t` is unused (ODE-style signature)."""
    del t
    batch = u_extended.shape[0]
    w_fused, b_fused = _fuse_cgn_params(w, b)

    # Lane-dense layout: batch lives on the 128-lane axis.  Pad the batch so the
    # tile evenly divides it (arbitrary batch sizes supported).
    b_lanes = _round_up(batch, 128)
    tb = min(_round_up(tile_b, 128), b_lanes)
    if b_lanes // tb < 2 and b_lanes % 256 == 0:
        tb = b_lanes // 2            # keep >= 2 grid steps so both v7x TCs get work
    b_pad = _round_up(b_lanes, tb)

    x_t = u_extended.astype(jnp.float32).T              # (24, B)  layout glue
    if b_pad != batch:
        x_t = jnp.pad(x_t, ((0, 0), (0, b_pad - batch)))

    grid = (b_pad // tb,)
    out_t = pl.pallas_call(
        cgkn_kernel,
        out_shape=jax.ShapeDtypeStruct((DIM_IN, b_pad), jnp.float32),
        grid_spec=pltpu.PrefetchScalarGridSpec(
            num_scalar_prefetch=0,
            grid=grid,
            in_specs=[
                pl.BlockSpec((DIM_IN, tb), lambda i: (0, i)),
                pl.BlockSpec((DIM_IN, DIM_FEATS), lambda i: (0, 0)),   # weight resident
                pl.BlockSpec((DIM_IN, 1), lambda i: (0, 0)),           # bias resident
            ],
            out_specs=pl.BlockSpec((DIM_IN, tb), lambda i: (0, i)),
        ),
        compiler_params=pltpu.CompilerParams(
            dimension_semantics=("parallel",)),
        cost_estimate=pl.CostEstimate(
            flops=2 * b_pad * DIM_FEATS * DIM_IN + b_pad * DIM_Z2 * DIM_K_PAD,
            transcendentals=0,
            bytes_accessed=2 * b_pad * DIM_IN * 4
            + (DIM_IN * DIM_FEATS + DIM_IN) * 4),
    )(x_t, w_fused, b_fused)

    return out_t[:, :batch].T                            # back to (B, 24)


def cgkn_reference(u_extended, w, b):
    """Pure-JAX reference mirroring the PyTorch forward exactly."""
    B = u_extended.shape[0]
    z1 = u_extended[:, :DIM_Z1]
    z2 = u_extended[:, DIM_Z1:]
    out = jnp.dot(z1, w.T, precision=jax.lax.Precision.HIGHEST) + b
    f1 = out[:, :N_F1]
    g1 = out[:, N_F1:N_F1 + N_G1].reshape(B, DIM_Z1, DIM_Z2)
    f2 = out[:, N_F1 + N_G1:N_F1 + N_G1 + N_F2]
    g2 = out[:, N_F1 + N_G1 + N_F2:].reshape(B, DIM_Z2, DIM_Z2)
    z1_dot = f1 + jnp.sum(g1 * z2[:, None, :], axis=-1)
    z2_dot = f2 + jnp.sum(g2 * z2[:, None, :], axis=-1)
    return jnp.concatenate([z1_dot, z2_dot], axis=-1)


if __name__ == "__main__":
    key = jax.random.PRNGKey(0)
    k_u, k_w, k_b = jax.random.split(key, 3)

    # batch_size = 200 in the reference script; also exercises the padding path
    # (200 -> 256 lanes) and a 2-step grid.
    batch = 200
    u_extended = jax.random.normal(k_u, (batch, DIM_IN), dtype=jnp.float32)

    # Deterministic init of cgn.net (nn.Linear(12, 312)): U(-1/sqrt(12), 1/sqrt(12))
    bound = 1.0 / (DIM_Z1 ** 0.5)
    w = jax.random.uniform(k_w, (DIM_OUT_CGN, DIM_Z1), jnp.float32, -bound, bound)
    b = jax.random.uniform(k_b, (DIM_OUT_CGN,), jnp.float32, -bound, bound)

    t = jnp.float32(0.0)  # unused by the forward (ODE-style signature)

    out = jax.block_until_ready(cgkn_forward(t, u_extended, w, b))

    ref = cgkn_reference(u_extended, w, b)
    assert out.shape == (batch, DIM_IN)
    assert jnp.allclose(out, ref, atol=2e-4, rtol=2e-4), "mismatch vs reference"

    print("KERNEL_OK")
</pallas_src>

<mosaic_0001>
module attributes {stable_mosaic.version = 11 : i64} {
  func.func @cgkn_kernel(%arg0: i32, %arg1: memref<24x128xf32, #tpu.memory_space<vmem>>, %arg2: memref<24x216xf32, #tpu.memory_space<vmem>>, %arg3: memref<24x1xf32, #tpu.memory_space<vmem>>, %arg4: memref<24x128xf32, #tpu.memory_space<vmem>>) attributes {dimension_semantics = [#tpu.dimension_semantics<parallel>], iteration_bounds = array<i64: 2>, scalar_prefetch = 0 : i64, scratch_operands = 0 : i64, tpu.core_type = #tpu.core_type<tc>, window_params = [{transform_indices = @transform_0, window_bounds = array<i64: 24, 128>}, {pipeline_mode = #tpu.pipeline_mode<synchronous>, transform_indices = @transform_1, window_bounds = array<i64: 24, 216>}, {pipeline_mode = #tpu.pipeline_mode<synchronous>, transform_indices = @transform_2, window_bounds = array<i64: 24, 1>}, {transform_indices = @transform_3, window_bounds = array<i64: 24, 128>}]} {
    %c0 = arith.constant 0 : index
    %c0_0 = arith.constant 0 : index
    %0 = vector.load %arg1[%c0, %c0_0] : memref<24x128xf32, #tpu.memory_space<vmem>>, vector<24x128xf32>
    %1 = vector.extract_strided_slice %0 {offsets = [0, 0], sizes = [16, 128], strides = [1, 1]} : vector<24x128xf32> to vector<16x128xf32>
    %2 = vector.extract_strided_slice %0 {offsets = [12, 0], sizes = [1, 128], strides = [1, 1]} : vector<24x128xf32> to vector<1x128xf32>
    %3 = vector.broadcast %2 : vector<1x128xf32> to vector<16x128xf32>
    %4 = arith.mulf %3, %1 : vector<16x128xf32>
    %5 = vector.extract_strided_slice %0 {offsets = [13, 0], sizes = [1, 128], strides = [1, 1]} : vector<24x128xf32> to vector<1x128xf32>
    %6 = vector.broadcast %5 : vector<1x128xf32> to vector<16x128xf32>
    %7 = arith.mulf %6, %1 : vector<16x128xf32>
    %8 = vector.extract_strided_slice %0 {offsets = [14, 0], sizes = [1, 128], strides = [1, 1]} : vector<24x128xf32> to vector<1x128xf32>
    %9 = vector.broadcast %8 : vector<1x128xf32> to vector<16x128xf32>
    %10 = arith.mulf %9, %1 : vector<16x128xf32>
    %11 = vector.extract_strided_slice %0 {offsets = [15, 0], sizes = [1, 128], strides = [1, 1]} : vector<24x128xf32> to vector<1x128xf32>
    %12 = vector.broadcast %11 : vector<1x128xf32> to vector<16x128xf32>
    %13 = arith.mulf %12, %1 : vector<16x128xf32>
    %14 = vector.extract_strided_slice %0 {offsets = [16, 0], sizes = [1, 128], strides = [1, 1]} : vector<24x128xf32> to vector<1x128xf32>
    %15 = vector.broadcast %14 : vector<1x128xf32> to vector<16x128xf32>
    %16 = arith.mulf %15, %1 : vector<16x128xf32>
    %17 = vector.extract_strided_slice %0 {offsets = [17, 0], sizes = [1, 128], strides = [1, 1]} : vector<24x128xf32> to vector<1x128xf32>
    %18 = vector.broadcast %17 : vector<1x128xf32> to vector<16x128xf32>
    %19 = arith.mulf %18, %1 : vector<16x128xf32>
    %20 = vector.extract_strided_slice %0 {offsets = [18, 0], sizes = [1, 128], strides = [1, 1]} : vector<24x128xf32> to vector<1x128xf32>
    %21 = vector.broadcast %20 : vector<1x128xf32> to vector<16x128xf32>
    %22 = arith.mulf %21, %1 : vector<16x128xf32>
    %23 = vector.extract_strided_slice %0 {offsets = [19, 0], sizes = [1, 128], strides = [1, 1]} : vector<24x128xf32> to vector<1x128xf32>
    %24 = vector.broadcast %23 : vector<1x128xf32> to vector<16x128xf32>
    %25 = arith.mulf %24, %1 : vector<16x128xf32>
    %26 = vector.extract_strided_slice %0 {offsets = [20, 0], sizes = [1, 128], strides = [1, 1]} : vector<24x128xf32> to vector<1x128xf32>
    %27 = vector.broadcast %26 : vector<1x128xf32> to vector<16x128xf32>
    %28 = arith.mulf %27, %1 : vector<16x128xf32>
    %29 = vector.extract_strided_slice %0 {offsets = [21, 0], sizes = [1, 128], strides = [1, 1]} : vector<24x128xf32> to vector<1x128xf32>
    %30 = vector.broadcast %29 : vector<1x128xf32> to vector<16x128xf32>
    %31 = arith.mulf %30, %1 : vector<16x128xf32>
    %32 = vector.extract_strided_slice %0 {offsets = [22, 0], sizes = [1, 128], strides = [1, 1]} : vector<24x128xf32> to vector<1x128xf32>
    %33 = vector.broadcast %32 : vector<1x128xf32> to vector<16x128xf32>
    %34 = arith.mulf %33, %1 : vector<16x128xf32>
    %35 = vector.extract_strided_slice %0 {offsets = [23, 0], sizes = [1, 128], strides = [1, 1]} : vector<24x128xf32> to vector<1x128xf32>
    %36 = vector.broadcast %35 : vector<1x128xf32> to vector<16x128xf32>
    %37 = arith.mulf %36, %1 : vector<16x128xf32>
    %38 = tpu.concatenate %0, %4, %7, %10, %13, %16, %19, %22, %25, %28, %31, %34, %37 in 0 : vector<24x128xf32>, vector<16x128xf32>, vector<16x128xf32>, vector<16x128xf32>, vector<16x128xf32>, vector<16x128xf32>, vector<16x128xf32>, vector<16x128xf32>, vector<16x128xf32>, vector<16x128xf32>, vector<16x128xf32>, vector<16x128xf32>, vector<16x128xf32> -> vector<216x128xf32>
    %c0_1 = arith.constant 0 : index
    %c0_2 = arith.constant 0 : index
    %39 = vector.load %arg2[%c0_1, %c0_2] : memref<24x216xf32, #tpu.memory_space<vmem>>, vector<24x216xf32>
    %cst = arith.constant dense<0.000000e+00> : vector<24x128xf32>
    %40 = tpu.matmul %39, %38, %cst {dimension_numbers = #tpu.dot_dimension_numbers<[1], [0], [0], [1], [0, 0, 1, 1], [], []>, precision = #tpu.contract_precision<fp32>} : vector<24x216xf32>, vector<216x128xf32>, vector<24x128xf32> -> vector<24x128xf32>
    %c0_3 = arith.constant 0 : index
    %c0_4 = arith.constant 0 : index
    %41 = vector.load %arg3[%c0_3, %c0_4] : memref<24x1xf32, #tpu.memory_space<vmem>>, vector<24x1xf32>
    %42 = vector.broadcast %41 : vector<24x1xf32> to vector<24x128xf32>
    %43 = arith.addf %40, %42 : vector<24x128xf32>
    %c0_5 = arith.constant 0 : index
    %c0_6 = arith.constant 0 : index
    %44 = vector.load %arg4[%c0_5, %c0_6] : memref<24x128xf32, #tpu.memory_space<vmem>>, vector<24x128xf32>
    tpu.vector_store %arg4[%c0_5, %c0_6], %43 {strides = array<i32>} : memref<24x128xf32, #tpu.memory_space<vmem>>, vector<24x128xf32>,
    return
  }
  func.func @transform_0(%arg0: i32) -> (i32, i32) {
    %c0_i32 = arith.constant 0 : i32
    %c0_i32_0 = arith.constant 0 : i32
    return %c0_i32, %arg0 : i32, i32
  }
  func.func @transform_1(%arg0: i32) -> (i32, i32) {
    %c0_i32 = arith.constant 0 : i32
    %c0_i32_0 = arith.constant 0 : i32
    %c0_i32_1 = arith.constant 0 : i32
    return %c0_i32, %c0_i32_0 : i32, i32
  }
  func.func @transform_2(%arg0: i32) -> (i32, i32) {
    %c0_i32 = arith.constant 0 : i32
    %c0_i32_0 = arith.constant 0 : i32
    %c0_i32_1 = arith.constant 0 : i32
    return %c0_i32, %c0_i32_0 : i32, i32
  }
  func.func @transform_3(%arg0: i32) -> (i32, i32) {
    %c0_i32 = arith.constant 0 : i32
    %c0_i32_0 = arith.constant 0 : i32
    return %c0_i32, %arg0 : i32, i32
  }
}

</mosaic_0001>

<bundles_post_ra>
// kernel: cgkn_forward.1
= control target key start
LH: loop header
LB: loop body
LE: loop exit
PB: predicated region body
PF: predicated region fallthrough
CT: control target
= control target key end

     0   :  { %s1684_s12 = smov 0   ;;  %s1686_s13 = smov 0   ;;  %s2412_s0 = inlined_call_operand.vmem [shape: f32[24,256], index: 0, kind: input, shape index: {}]   ;;  %s2413_s1 = inlined_call_operand.vmem [shape: f32[24,216], index: 1, kind: input, shape index: {}]   ;;  %s2414_s2 = inlined_call_operand.vmem [shape: f32[24,1], index: 2, kind: input, shape index: {}]   ;;  %s2415_s3 = inlined_call_operand.vmem [shape: f32[24,256], index: 3, kind: output, shape index: {}]  }
   0x1   :  { %s1688_s14 = smov 0  }
   0x2 LB: > { %s1333_s15 = sadd.s32 4294967295, %s1659_s14   ;;  %s1701_s16 = sadd.s32 1, %s1659_s14   ;;  %s1659_s14 = sphi %s1688_s14, %s2530_s14   ;;  %s1655_s13 = sphi %s1686_s13, %s2529_s13   ;;  %s1651_s12 = sphi %s1684_s12, %s2528_s12  }
   0x3   : > { %s17_s17 = ssub.s32 %s1659_s14, %s1701_s16  ;;  %s20_s18 = sadd.s32 1, %s1655_s13 }
   0x4   : > { %p18_p0 = scmp.eq.s32.totalorder %s17_s17, 0  ;;  %p27_p1 = scmp.ne.s32.totalorder %s1655_s13, %s1651_s12 }
   0x5   : > { %p28_p2 = scmp.eq.s32.totalorder %s1659_s14, 0  ;;  %p99_p3 = scmp.eq.s32.totalorder %s1333_s15, 1 }
   0x6   : > { %s1712_s19 = scalar_select %p18_p0, %s1655_s13, %s20_s18  }
   0x7   : > { %p29_p4 = por %p28_p2, %p27_p1  ;;  %p1714_p5 = por %p99_p3, %p27_p1 }
   0x8   : > { %p1336_p6 = scmp.ge.s32.totalorder %s1659_s14, 2 }
   0xa   : > { %127 = sbr.rel (%p1336_p6) target bundleno = 24 (0x18), region = 24 }
  0x11   : > { %130 = sbr.rel (!%p29_p4) target bundleno = 24 (0x18), region = 28  ;;  %s132_s21 = sand.u32 (%p29_p4), 1, %s1655_s13  }
  0x12   : > { %s1337_s22 = sshll.u32 (%p29_p4), %s1659_s14, 3  ;;  %s1606_s23 = smul.u32 (%p29_p4), 24, %s132_s21 }
  0x13   : > { %s136_s26 = scalar_lea.vmem (%p29_p4), %s2412_s0, %s1337_s22 }
  0x14   : > { %v168_v0 = vld [vmem:[%s136_s26] sm:$0xff] (%p29_p4)  ;;  %v170_v1 = vld [vmem:[%s136_s26 + $0x10] sm:$0xff] (%p29_p4)  ;;  %s134_s27 = scalar_lea.vmem (%p29_p4), [#allocation2], %s1606_s23 }
  0x15   : > { %v172_v2 = vld [vmem:[%s136_s26 + $0x20] sm:$0xff] (%p29_p4)  ;;  %169 = vst [vmem:[%s134_s27] sm:$0xff] (%p29_p4), %v168_v0  ;;  %171 = vst [vmem:[%s134_s27 + $0x8] sm:$0xff] (%p29_p4), %v170_v1 }
  0x16   : > { %173 = vst [vmem:[%s134_s27 + $0x10] sm:$0xff] (%p29_p4), %v172_v2 }
  0x18 PF: > { %p1338_p7 = scmp.ge.s32.totalorder %s1659_s14, 1  ;;  %p178_p8 = scmp.lt.s32.totalorder %s1659_s14, 3 }
  0x1a   : > { %p179_p9 = pnand %p1338_p7, %p178_p8 }
  0x1c   : > { %182 = sbr.rel (%p179_p9) target bundleno = 441 (0x1b9), region = 66 }
  0x23   : > { %s185_s28 = sand.u32 1, %s1651_s12   ;;  %v210_v3 = vlaneseq  ;;  %v2432_v4 = vmov 0.0|0.0   ;;  %vm306_vm0 = vcmask 719872   ;;  %v283_v30 = vld [vmem:[%s2413_s1 + $0x8] sm:$0xff] }
  0x24   : > { %1342 = vmatprep.subr.bf16.mxu1 %v2432_v4  ;;  %1459 = vmatprep.subr.bf16.mxu0 %v2432_v4  ;;  %s1729_s29 = smul.u32 24, %s185_s28  ;;  %v308_v35 = vsel %vm306_vm0, %v283_v30, 0 }
  0x25   : > { %v1731_v5 = vshrl.u32 %v210_v3, 7  ;;  %v1828_v43 = vand.u32 4294901760, %v308_v35 }
  0x26   : > { %s187_s30 = scalar_lea.vmem [#allocation2], %s1729_s29  ;;  %s206_s28 = scalar_lea.vmem [#allocation3], %s1729_s29 }
  0x27   : > { %v1734_v6 = vld [vmem:[%s187_s30] sm:$0xff]  ;;  %v1736_v7 = vld [vmem:[%s187_s30 + $0x8] sm:$0xff]  ;;  %v212_v8 = vsub.s32 4, %v1731_v5  ;;  %v218_v9 = vsub.s32 5, %v1731_v5  ;;  %v224_v10 = vsub.s32 6, %v1731_v5  ;;  %v1743_v13 = vld [vmem:[%s187_s30 + $0x10] sm:$0xff]  ;;  %v1846_v51 = vsub.f32 %v308_v35, %v1828_v43 }
  0x28   : > { %v317_v11 = vand.u32 4294901760, %v1734_v6  ;;  %v320_v12 = vand.u32 4294901760, %v1736_v7  ;;  %v230_v17 = vsub.s32 7, %v1731_v5  ;;  %v323_v20 = vand.u32 4294901760, %v1743_v13  ;;  %s1339_s29 = sshll.u32 (%p1714_p5), %s1333_s15, 3 }
  0x29   : > { %v213_v14 = vrot.slane %v1736_v7, %v212_v8  ;;  %v219_v15 = vrot.slane %v1736_v7, %v218_v9  ;;  %v225_v16 = vrot.slane %v1736_v7, %v224_v10  ;;  %v236_v25 = vsub.s32 0, %v1731_v5  ;;  %2467 = vst [vmem:[#allocation7_spill] sm:$0xff] %v1846_v51  ;;  %s1236_s5 = scalar_lea.vmem (%p1714_p5), %s2415_s3, %s1339_s29 }
  0x2a   : > { %v1759_v18 = vpack.c.bf16 %v320_v12, %v317_v11  ;;  %v231_v29 = vrot.slane %v1736_v7, %v230_v17  ;;  %v242_v39 = vsub.s32 1, %v1731_v5  ;;  %v248_v47 = vsub.s32 2, %v1731_v5 }
  0x2b   : > { %v1762_v19 = vmul.f32 %v213_v14, %v1734_v6  ;;  %v1766_v21 = vmul.f32 %v213_v14, %v1736_v7  ;;  %v1769_v22 = vmul.f32 %v219_v15, %v1734_v6  ;;  %v1774_v23 = vmul.f32 %v219_v15, %v1736_v7 }
  0x2c   : > { %1344 = vmatpush1.bf16.msra.mxu1 %v1759_v18  ;;  %1461 = vmatpush1.bf16.msra.mxu0 %v1759_v18  ;;  %v1777_v24 = vmul.f32 %v225_v16, %v1734_v6  ;;  %v1800_v34 = vmul.f32 %v225_v16, %v1736_v7  ;;  %v1812_v37 = vmul.f32 %v231_v29, %v1734_v6  ;;  %v254_v50 = vsub.s32 3, %v1731_v5 }
  0x2d   : > { %1345 = vmatprep.subr.bf16.mxu1 %v2432_v4  ;;  %1462 = vmatprep.subr.bf16.mxu0 %v2432_v4  ;;  %v326_v26 = vand.u32 4294901760, %v1762_v19  ;;  %v329_v27 = vand.u32 4294901760, %v1766_v21  ;;  %v332_v28 = vand.u32 4294901760, %v1769_v22  ;;  %v335_v32 = vand.u32 4294901760, %v1774_v23 }
  0x2e   : > { %v2434_v33 = vand.u32 4294901760, %v1777_v24  ;;  %v237_v38 = vrot.slane %v1743_v13, %v236_v25  ;;  %v2431_v41 = vand.u32 4294901760, %v1800_v34  ;;  %v1826_v42 = vmul.f32 %v231_v29, %v1736_v7 }
  0x2f   : > { %v1795_v31 = vpack.c.bf16 %v326_v26, %v323_v20  ;;  %v1809_v36 = vpack.c.bf16 %v332_v28, %v329_v27  ;;  %v2430_v44 = vand.u32 4294901760, %v1812_v37  ;;  %v243_v46 = vrot.slane %v1743_v13, %v242_v39 }
  0x30   : > { %v1822_v40 = vpack.c.bf16 %v2434_v33, %v335_v32  ;;  %v1834_v45 = vmul.f32 %v237_v38, %v1734_v6  ;;  %v2429_v48 = vand.u32 4294901760, %v1826_v42  ;;  %v1842_v49 = vmul.f32 %v237_v38, %v1736_v7 }
  0x31   : > { %2464 = vst [vmem:[#allocation4_spill] sm:$0xff] %v1795_v31  ;;  %1347 = vmatpush1.bf16.msra.mxu1 %v1795_v31  ;;  %1464 = vmatpush1.bf16.msra.mxu0 %v1795_v31  ;;  %2465 = vst [vmem:[#allocation5_spill] sm:$0xff] %v1809_v36  ;;  %v1854_v52 = vpack.c.bf16 %v2430_v44, %v2431_v41  ;;  %v1858_v54 = vmul.f32 %v243_v46, %v1734_v6  ;;  %v409_v62 = vand.u32 4294901760, %v1846_v51 }
  0x32   : > { %1348 = vmatprep.subr.bf16.mxu1 %v2432_v4  ;;  %1465 = vmatprep.subr.bf16.mxu0 %v2432_v4  ;;  %2466 = vst [vmem:[#allocation6_spill] sm:$0xff] %v1822_v40  ;;  %v2428_v53 = vand.u32 4294901760, %v1834_v45  ;;  %v249_v55 = vrot.slane %v1743_v13, %v248_v47  ;;  %v2423_v56 = vand.u32 4294901760, %v1842_v49  ;;  %v1865_v57 = vmul.f32 %v243_v46, %v1736_v7 }
  0x33   : > { %2468 = vst [vmem:[#allocation8_spill] sm:$0xff] %v1854_v52  ;;  %v255_v58 = vrot.slane %v1743_v13, %v254_v50  ;;  %v2422_v60 = vand.u32 4294901760, %v1858_v54  ;;  %v410_v63 = vsub.f32 %v1846_v51, %v409_v62  ;;  %914 = vmatprep.mubr.f32.mxu0 %v409_v62  ;;  %v261_v2 = vrot.slane %v1743_v13, %v212_v8 }
  0x34   : > { %v1874_v59 = vpack.c.bf16 %v2428_v53, %v2429_v48  ;;  %v1878_v61 = vmul.f32 %v249_v55, %v1734_v6  ;;  %v2421_v0 = vand.u32 4294901760, %v1865_v57  ;;  %v1886_v1 = vmul.f32 %v249_v55, %v1736_v7  ;;  %v286_v53 = vld [vmem:[%s2413_s1 + $0x20] sm:$0xff] }
  0x35   : > { %1350 = vmatpush1.bf16.msra.mxu1 %v1809_v36  ;;  %1467 = vmatpush1.bf16.msra.mxu0 %v1809_v36  ;;  %v1897_v3 = vpack.c.bf16 %v2422_v60, %v2423_v56  ;;  %v1901_v15 = vmul.f32 %v255_v58, %v1734_v6  ;;  %v411_v16 = vand.u32 4294901760, %v410_v63  ;;  %v1907_v25 = vmul.f32 %v261_v2, %v1734_v6 }
  0x36   : > { %1351 = vmatprep.subr.bf16.mxu1 %v2432_v4  ;;  %1468 = vmatprep.subr.bf16.mxu0 %v2432_v4  ;;  %2469 = vst [vmem:[#allocation9_spill] sm:$0xff] %v1874_v59  ;;  %v2420_v14 = vand.u32 4294901760, %v1878_v61  ;;  %v2417_v8 = vand.u32 4294901760, %v1886_v1  ;;  %v1919_v35 = vmul.f32 %v255_v58, %v1736_v7  ;;  %v267_v38 = vrot.slane %v1743_v13, %v218_v9  ;;  %v282_v58 = vld [vmem:[%s2413_s1] sm:$0xff] }
  0x37   : > { %2470 = vst [vmem:[#allocation10_spill] sm:$0xff] %v1897_v3  ;;  %412 = vmatprep.mubr.f32.mxu1 %v411_v16  ;;  %v2416_v30 = vand.u32 4294901760, %v1901_v15  ;;  %v2418_v39 = vand.u32 4294901760, %v1907_v25  ;;  %v1928_v46 = vmul.f32 %v261_v2, %v1736_v7  ;;  %v273_v55 = vrot.slane %v1743_v13, %v224_v10 }
  0x38   : > { %v1915_v29 = vpack.c.bf16 %v2420_v14, %v2421_v0  ;;  %v2419_v9 = vand.u32 4294901760, %v1919_v35  ;;  %v1940_v50 = vmul.f32 %v267_v38, %v1734_v6  ;;  %v1952_v63 = vmul.f32 %v267_v38, %v1736_v7 }
  0x39   : > { %1353 = vmatpush1.bf16.msra.mxu1 %v1822_v40  ;;  %1470 = vmatpush1.bf16.msra.mxu0 %v1822_v40  ;;  %v1936_v47 = vpack.c.bf16 %v2416_v30, %v2417_v8  ;;  %v2425_v62 = vand.u32 4294901760, %v1928_v46  ;;  %v1954_v2 = vand.u32 4294901760, %v282_v58  ;;  %v1966_v30 = vmul.f32 %v273_v55, %v1734_v6 }
  0x3a   : > { %1354 = vmatprep.subr.bf16.mxu1 %v2432_v4  ;;  %1471 = vmatprep.subr.bf16.mxu0 %v2432_v4  ;;  %2471 = vst [vmem:[#allocation11_spill] sm:$0xff] %v1915_v29  ;;  %v1962_v10 = vpack.c.bf16 %v2418_v39, %v2419_v9  ;;  %v2424_v16 = vand.u32 4294901760, %v1940_v50  ;;  %v279_v38 = vrot.slane %v1743_v13, %v230_v17  ;;  %v2427_v9 = vand.u32 4294901760, %v1952_v63  ;;  %v285_v17 = vld [vmem:[%s2413_s1 + $0x18] sm:$0xff] }
  0x3b   : > { %2472 = vst [vmem:[#allocation12_spill] sm:$0xff] %v1936_v47  ;;  %v1976_v8 = vsub.f32 %v1734_v6, %v317_v11  ;;  %v1981_v39 = vsub.f32 %v1736_v7, %v320_v12  ;;  %v1985_v5 = vsub.f32 %v282_v58, %v1954_v2  ;;  %v2426_v12 = vand.u32 4294901760, %v1966_v30 }
  0x3c   : > { %2473 = vst [vmem:[#allocation13_spill] sm:$0xff] %v1962_v10  ;;  %v1996_v11 = vpack.c.bf16 %v2424_v16, %v2425_v62  ;;  %v2000_v14 = vmul.f32 %v273_v55, %v1736_v7  ;;  %v2003_v58 = vmul.f32 %v279_v38, %v1734_v6  ;;  %v311_v56 = vsel %vm306_vm0, %v285_v17, 0  ;;  %v284_v16 = vld [vmem:[%s2413_s1 + $0x10] sm:$0xff] }
  0x3d   : > { %1356 = vmatpush1.bf16.msra.mxu1 %v1854_v52  ;;  %1473 = vmatpush1.bf16.msra.mxu0 %v1854_v52  ;;  %2474 = vst [vmem:[#allocation14_spill] sm:$0xff] %v1985_v5  ;;  %v456_v0 = vand.u32 4294901760, %v1976_v8  ;;  %v463_v60 = vand.u32 4294901760, %v1981_v39  ;;  %v2016_v55 = vsub.f32 %v1743_v13, %v323_v20  ;;  %v2021_v6 = vsub.f32 %v1762_v19, %v326_v26  ;;  %v287_v19 = vld [vmem:[%s2413_s1 + $0x28] sm:$0xff] }
  0x3e   : > { %1357 = vmatprep.subr.bf16.mxu1 %v2432_v4  ;;  %1474 = vmatprep.subr.bf16.mxu0 %v2432_v4  ;;  %2475 = vst [vmem:[#allocation15_spill] sm:$0xff] %v1996_v11  ;;  %v2029_v17 = vpack.c.bf16 %v2426_v12, %v2427_v9  ;;  %v2438_v62 = vand.u32 4294901760, %v2000_v14  ;;  %v2437_v13 = vand.u32 4294901760, %v2003_v58  ;;  %v2439_v20 = vand.u32 4294901760, %v1985_v5 }
  0x3f   : > { %v2040_v26 = vsub.f32 %v1766_v21, %v329_v27  ;;  %v2044_v12 = vand.u32 4294901760, %v311_v56  ;;  %v2046_v9 = vand.u32 4294901760, %v284_v16  ;;  %v2054_v48 = vsub.f32 %v1769_v22, %v332_v28 }
  0x40   : > { %2476 = vst [vmem:[#allocation16_spill] sm:$0xff] %v2029_v17  ;;  %v457_v21 = vsub.f32 %v1976_v8, %v456_v0  ;;  %v464_v27 = vsub.f32 %v1981_v39, %v463_v60  ;;  %v2061_v44 = vsub.f32 %v1774_v23, %v335_v32  ;;  %v470_v41 = vand.u32 4294901760, %v2016_v55 }
  0x41   : > { %1359 = vmatpush1.bf16.msra.mxu1 %v1874_v59  ;;  %1476 = vmatpush1.bf16.msra.mxu0 %v1874_v59  ;;  %2477 = vst [vmem:[#allocation17_spill] sm:$0xff] %v2044_v12  ;;  %2478 = vst [vmem:[#allocation18_spill] sm:$0xff] %v2046_v9  ;;  %v314_v33 = vsel %vm306_vm0, %v287_v19, 0  ;;  %v2072_v22 = vpack.c.bf16 %v2437_v13, %v2438_v62  ;;  %v2075_v28 = vmul.f32 %v279_v38, %v1736_v7 }
  0x42   : > { %1360 = vmatprep.subr.bf16.mxu1 %v2432_v4  ;;  %1477 = vmatprep.subr.bf16.mxu0 %v2432_v4  ;;  %2479 = vst [vmem:[#allocation19_spill] sm:$0xff] %v2054_v48  ;;  %v416_v23 = vsub.f32 %v1985_v5, %v2439_v20  ;;  %v2080_v32 = vand.u32 4294901760, %v286_v53  ;;  %v2481_v19 = vand.u32 4294901760, %v1777_v24  ;;  %v484_v13 = vand.u32 4294901760, %v2040_v26 }
  0x43   : > { %2480 = vst [vmem:[#allocation20_spill] sm:$0xff] %v2072_v22  ;;  %v2091_v7 = vsub.f32 %v311_v56, %v2044_v12  ;;  %v2094_v38 = vsub.f32 %v284_v16, %v2046_v9  ;;  %v2485_v62 = vand.u32 4294901760, %v1800_v34  ;;  %v2486_v16 = vand.u32 4294901760, %v1812_v37 }
  0x44   : > { %v1499_v52 = vpack.c.bf16 %v463_v60, %v456_v0  ;;  %v485_v40 = vsub.f32 %v2040_v26, %v484_v13  ;;  %v2130_v60 = vsub.f32 %v286_v53, %v2080_v32  ;;  %v2489_v0 = vand.u32 4294901760, %v1826_v42 }
  0x45   : > { %1362 = vmatpush1.bf16.msra.mxu1 %v1897_v3  ;;  %1479 = vmatpush1.bf16.msra.mxu0 %v1897_v3  ;;  %2483 = vst [vmem:[#allocation21_spill] sm:$0xff] %v2091_v7  ;;  %2484 = vst [vmem:[#allocation22_spill] sm:$0xff] %v2094_v38  ;;  %v2099_v20 = vsub.f32 %v1800_v34, %v2485_v62  ;;  %v424_v3 = vand.u32 4294901760, %v2091_v7  ;;  %v430_v56 = vand.u32 4294901760, %v2094_v38  ;;  %v2114_v34 = vand.u32 4294901760, %v2075_v28 }
  0x46   : > { %1363 = vmatprep.subr.bf16.mxu1 %v2432_v4  ;;  %1480 = vmatprep.subr.bf16.mxu0 %v2432_v4  ;;  %v2109_v59 = vsub.f32 %v1812_v37, %v2486_v16  ;;  %v417_v62 = vand.u32 4294901760, %v416_v23  ;;  %v498_v37 = vand.u32 4294901760, %v2061_v44  ;;  %2488 = vst [vmem:[#allocation24_spill] sm:$0xff] %v2130_v60  ;;  %v486_v53 = vand.u32 4294901760, %v485_v40 }
  0x47   : > { %v425_v16 = vsub.f32 %v2091_v7, %v424_v3  ;;  %v431_v23 = vsub.f32 %v2094_v38, %v430_v56  ;;  %v2490_v7 = vand.u32 4294901760, %v1834_v45  ;;  %v512_v40 = vand.u32 4294901760, %v2099_v20 }
  0x48   : > { %v519_v38 = vand.u32 4294901760, %v2109_v59 }
  0x49   : > { %1365 = vmatpush1.bf16.msra.mxu1 %v1915_v29  ;;  %1482 = vmatpush1.bf16.msra.mxu0 %v1915_v29 }
  0x4a   : > { %1366 = vmatprep.subr.bf16.mxu1 %v2432_v4  ;;  %1483 = vmatprep.subr.bf16.mxu0 %v2432_v4 }
  0x4d   : > { %1368 = vmatpush1.bf16.msra.mxu1 %v1936_v47  ;;  %1485 = vmatpush1.bf16.msra.mxu0 %v1936_v47  ;;  %v471_v47 = vsub.f32 %v2016_v55, %v470_v41 }
  0x4e   : > { %1369 = vmatprep.subr.bf16.mxu1 %v2432_v4  ;;  %1486 = vmatprep.subr.bf16.mxu0 %v2432_v4 }
  0x4f   : > { %v472_v9 = vand.u32 4294901760, %v471_v47  ;;  %v426_v47 = vand.u32 4294901760, %v425_v16 }
  0x51   : > { %1371 = vmatpush1.bf16.msra.mxu1 %v1962_v10  ;;  %1488 = vmatpush1.bf16.msra.mxu0 %v1962_v10  ;;  %v458_v10 = vand.u32 4294901760, %v457_v21  ;;  %v2116_v21 = vand.u32 4294901760, %v314_v33 }
  0x52   : > { %1372 = vmatprep.subr.bf16.mxu1 %v2432_v4  ;;  %1489 = vmatprep.subr.bf16.mxu0 %v2432_v4 }
  0x53   : > { %v2127_v36 = vsub.f32 %v314_v33, %v2116_v21 }
  0x55   : > { %1374 = vmatpush1.bf16.msra.mxu1 %v1996_v11  ;;  %1491 = vmatpush1.bf16.msra.mxu0 %v1996_v11  ;;  %v2085_v11 = vsub.f32 %v1777_v24, %v2481_v19  ;;  %v465_v24 = vand.u32 4294901760, %v464_v27  ;;  %v491_v19 = vand.u32 4294901760, %v2054_v48  ;;  %v2455_v27 = vmov 0.0   ;;  %2487 = vst [vmem:[#allocation23_spill] sm:$0xff] %v2127_v36 }
  0x56   : > { %1375 = vmatprep.subr.bf16.mxu1 %v2432_v4  ;;  %1492 = vmatprep.subr.bf16.mxu0 %v2432_v4  ;;  %v477_v4 = vand.u32 4294901760, %v2021_v6 }
  0x57   : > { %v505_v51 = vand.u32 4294901760, %v2085_v11  ;;  %v1382_v31 = vpack.c.bf16 %v465_v24, %v458_v10  ;;  %v445_v10 = vand.u32 4294901760, %v2130_v60 }
  0x58   : > { %v478_v29 = vsub.f32 %v2021_v6, %v477_v4  ;;  %v1502_v33 = vpack.c.bf16 %v477_v4, %v470_v41  ;;  %v432_v4 = vand.u32 4294901760, %v431_v23  ;;  %v2493_v23 = vand.u32 4294901760, %v1858_v54 }
  0x59   : > { %1377 = vmatpush1.bf16.msra.mxu1 %v2029_v17  ;;  %1494 = vmatpush1.bf16.msra.mxu0 %v2029_v17  ;;  %v2482_v17 = vmov 0.0|0.0   ;;  %v506_v24 = vsub.f32 %v2085_v11, %v505_v51  ;;  %v446_v16 = vsub.f32 %v2130_v60, %v445_v10 }
  0x5a   : > { %1378 = vmatprep.subr.bf16.mxu1 %v2482_v17  ;;  %1495 = vmatprep.subr.bf16.mxu0 %v2482_v17  ;;  %v479_v12 = vand.u32 4294901760, %v478_v29  ;;  %v439_v29 = vand.u32 4294901760, %v2127_v36 }
  0x5c   : > { %v440_v41 = vsub.f32 %v2127_v36, %v439_v29  ;;  %v447_v36 = vand.u32 4294901760, %v446_v16 }
  0x5d   : > { %1380 = vmatpush1.bf16.msra.mxu1 %v2072_v22  ;;  %1497 = vmatpush1.bf16.msra.mxu0 %v2072_v22  ;;  %v492_v22 = vsub.f32 %v2054_v48, %v491_v19  ;;  %v2140_v48 = vsub.f32 %v1834_v45, %v2490_v7  ;;  %v2491_v45 = vand.u32 4294901760, %v1985_v5  ;;  %v520_v5 = vsub.f32 %v2109_v59, %v519_v38 }
  0x5e   : > { %394 = vmatprep.subr.mxu1 %v2455_v27  ;;  %898 = vmatprep.subr.mxu0 %v2455_v27  ;;  %v2135_v27 = vsub.f32 %v1826_v42, %v2489_v0  ;;  %v499_v42 = vsub.f32 %v2061_v44, %v498_v37  ;;  %v1385_v0 = vpack.c.bf16 %v479_v12, %v472_v9  ;;  %v441_v9 = vand.u32 4294901760, %v440_v41 }
  0x5f   : > { %v493_v7 = vand.u32 4294901760, %v492_v22  ;;  %v2492_v22 = vand.u32 4294901760, %v1842_v49 }
  0x60   : > { %v500_v12 = vand.u32 4294901760, %v499_v42  ;;  %v526_v60 = vand.u32 4294901760, %v2135_v27 }
  0x61   : > { %396 = vmatpush1.msra.mxu1 %v2114_v34  ;;  %900 = vmatpush1.msra.mxu0 %v2114_v34 }
  0x62   : > { %1381 = vmatprep.subr.bf16.mxu1 %v2482_v17  ;;  %1498 = vmatprep.subr.bf16.mxu0 %v2482_v17  ;;  %v527_v42 = vsub.f32 %v2135_v27, %v526_v60 }
  0x63   : > { %418 = vmatmul.mubr.f32.vlgmr.msra.gmra.mrb[0].mxu1 %v417_v62  ;;  %918 = vmatmul.mubr.f32.vlgmr.msra.gmra.mrb[0].mxu0 %v2491_v45  ;;  %v2161_v62 = vsub.f32 %v1842_v49, %v2492_v22  ;;  %v507_v45 = vand.u32 4294901760, %v506_v24  ;;  %v1388_v49 = vpack.c.bf16 %v493_v7, %v486_v53  ;;  %v513_v22 = vsub.f32 %v2099_v20, %v512_v40 }
  0x64   : > { %1383 = vmatpush1.bf16.msra.mxu1 %v1382_v31  ;;  %1500 = vmatpush1.bf16.msra.mxu0 %v1499_v52  ;;  %v2166_v31 = vsub.f32 %v1858_v54, %v2493_v23  ;;  %v1505_v52 = vpack.c.bf16 %v491_v19, %v484_v13  ;;  %v533_v54 = vand.u32 4294901760, %v2140_v48  ;;  %v2495_v19 = vand.u32 4294901760, %v1878_v61 }
  0x65   : > { %1384 = vmatprep.subr.bf16.mxu1 %v2482_v17  ;;  %1501 = vmatprep.subr.bf16.mxu0 %v2482_v17  ;;  %v1391_v53 = vpack.c.bf16 %v507_v45, %v500_v12  ;;  %v521_v24 = vand.u32 4294901760, %v520_v5  ;;  %v1511_v5 = vpack.c.bf16 %v519_v38, %v512_v40  ;;  %v2499_v12 = vand.u32 4294901760, %v1907_v25 }
  0x66   : > { %427 = vmatprep.mubr.f32.mxu1 %v426_v47  ;;  %925 = vmatprep.mubr.f32.mxu0 %v424_v3  ;;  %v2494_v3 = vand.u32 4294901760, %v1865_v57  ;;  %v540_v47 = vand.u32 4294901760, %v2161_v62  ;;  %v547_v7 = vand.u32 4294901760, %v2166_v31 }
  0x67   : > { %433 = vmatmul.mubr.f32.gmra.mrb[2].mxu1 %v432_v4  ;;  %929 = vmatmul.mubr.f32.gmra.mrb[2].mxu0 %v430_v56  ;;  %v2182_v56 = vsub.f32 %v1878_v61, %v2495_v19  ;;  %v534_v4 = vsub.f32 %v2140_v48, %v533_v54  ;;  %v2222_v45 = vsub.f32 %v1907_v25, %v2499_v12 }
  0x68   : > { %1386 = vmatpush1.bf16.msra.mxu1 %v1385_v0  ;;  %1503 = vmatpush1.bf16.msra.mxu0 %v1502_v33  ;;  %v2177_v13 = vsub.f32 %v1865_v57, %v2494_v3  ;;  %v1508_v33 = vpack.c.bf16 %v505_v51, %v498_v37  ;;  %v514_v57 = vand.u32 4294901760, %v513_v22  ;;  %v2496_v51 = vand.u32 4294901760, %v1886_v1 }
  0x69   : > { %1387 = vmatprep.subr.bf16.mxu1 %v2482_v17  ;;  %1504 = vmatprep.subr.bf16.mxu0 %v2482_v17  ;;  %v2497_v37 = vand.u32 4294901760, %v1901_v15  ;;  %v548_v41 = vsub.f32 %v2166_v31, %v547_v7  ;;  %v1663_v0 = vmov 0   ;;  %v535_v38 = vand.u32 4294901760, %v534_v4 }
  0x6a   : > { %442 = vmatprep.mubr.f32.mxu1 %v441_v9  ;;  %936 = vmatprep.mubr.f32.mxu0 %v439_v29  ;;  %v2193_v61 = vsub.f32 %v1886_v1, %v2496_v51  ;;  %v528_v29 = vand.u32 4294901760, %v527_v42  ;;  %v288_v1 = vld [vmem:[%s2414_s2] sm:$0xff]  ;;  %v1394_v16 = vpack.c.bf16 %v521_v24, %v514_v57  ;;  %v554_v40 = vand.u32 4294901760, %v2177_v13 }
  0x6b   : > { %448 = vmatmul.mubr.f32.gmra.mrb[4].mxu1 %v447_v36  ;;  %940 = vmatmul.mubr.f32.gmra.mrb[4].mxu0 %v445_v10  ;;  %v2198_v36 = vsub.f32 %v1901_v15, %v2497_v37  ;;  %v541_v10 = vsub.f32 %v2161_v62, %v540_v47  ;;  %v290_v15 = vld [vmem:[%s2414_s2 + $0x10] sm:$0xff]  ;;  %v561_v23 = vand.u32 4294901760, %v2182_v56  ;;  %v549_v3 = vand.u32 4294901760, %v548_v41 }
  0x6c   : > { %1389 = vmatpush1.bf16.msra.mxu1 %v1388_v49  ;;  %1506 = vmatpush1.bf16.msra.mxu0 %v1505_v52  ;;  %v2498_v52 = vand.u32 4294901760, %v1919_v35  ;;  %v1514_v49 = vpack.c.bf16 %v533_v54, %v526_v60  ;;  %v568_v19 = vand.u32 4294901760, %v2193_v61  ;;  %v2500_v60 = vand.u32 4294901760, %v1928_v46 }
  0x6d   : > { %1390 = vmatprep.subr.bf16.mxu1 %v2482_v17  ;;  %1507 = vmatprep.subr.bf16.mxu0 %v2482_v17  ;;  %v542_v22 = vand.u32 4294901760, %v541_v10  ;;  %v562_v42 = vsub.f32 %v2182_v56, %v561_v23  ;;  %v575_v25 = vand.u32 4294901760, %v2198_v36  ;;  %v2501_v57 = vand.u32 4294901760, %v1940_v50 }
  0x6e   : > { %653 = vmatprep.mubr.f32.mxu1 %v1828_v43  ;;  %1091 = vmatprep.mubr.f32.mxu0 %v1828_v43  ;;  %v2217_v9 = vsub.f32 %v1919_v35, %v2498_v52  ;;  %v1397_v35 = vpack.c.bf16 %v535_v38, %v528_v29  ;;  %v2236_v54 = vsub.f32 %v1928_v46, %v2500_v60 }
  0x6f   : > { %1635 = vset.pattern.permute.xlu0 %v1663_v0  ;;  %1636 = vset.pattern.permute.xlu1 %v1663_v0  ;;  %v2241_v24 = vsub.f32 %v1940_v50, %v2501_v57  ;;  %v1400_v4 = vpack.c.bf16 %v549_v3, %v542_v22  ;;  %v1517_v51 = vpack.c.bf16 %v547_v7, %v540_v47  ;;  %v563_v10 = vand.u32 4294901760, %v562_v42 }
  0x70   : > { %1392 = vmatpush1.bf16.msra.mxu1 %v1391_v53  ;;  %1509 = vmatpush1.bf16.msra.mxu0 %v1508_v33  ;;  %v289_v33 = vld [vmem:[%s2414_s2 + $0x8] sm:$0xff]  ;;  %v555_v53 = vsub.f32 %v2177_v13, %v554_v40  ;;  %v582_v37 = vand.u32 4294901760, %v2217_v9  ;;  %v569_v41 = vsub.f32 %v2193_v61, %v568_v19  ;;  %v576_v46 = vsub.f32 %v2198_v36, %v575_v25 }
  0x71   : > { %1393 = vmatprep.subr.bf16.mxu1 %v2482_v17  ;;  %1510 = vmatprep.subr.bf16.mxu0 %v2482_v17  ;;  %v2502_v50 = vand.u32 4294901760, %v1952_v63  ;;  %v2503_v7 = vand.u32 4294901760, %v1966_v30  ;;  %v603_v38 = vand.u32 4294901760, %v2241_v24  ;;  %v1520_v12 = vpack.c.bf16 %v561_v23, %v554_v40 }
  0x72   : > { %293 = vperm.xlu0 %1635, %v288_v1   ;;  %303 = vperm.xlu1 %1636, %v290_v15   ;;  %v556_v29 = vand.u32 4294901760, %v555_v53  ;;  %v583_v1 = vsub.f32 %v2217_v9, %v582_v37  ;;  %v2505_v3 = vand.u32 4294901760, %v2003_v58  ;;  %v1523_v60 = vpack.c.bf16 %v575_v25, %v568_v19 }
  0x73   : > { %v2252_v47 = vsub.f32 %v1952_v63, %v2502_v50  ;;  %v2257_v0 = vsub.f32 %v1966_v30, %v2503_v7  ;;  %v577_v63 = vand.u32 4294901760, %v576_v46  ;;  %v2504_v30 = vand.u32 4294901760, %v2000_v14 }
  0x74   : > { %1395 = vmatpush1.bf16.msra.mxu1 %v1394_v16  ;;  %1512 = vmatpush1.bf16.msra.mxu0 %v1511_v5  ;;  %v589_v5 = vand.u32 4294901760, %v2222_v45  ;;  %v596_v16 = vand.u32 4294901760, %v2236_v54  ;;  %v1403_v52 = vpack.c.bf16 %v563_v10, %v556_v29  ;;  %v604_v23 = vsub.f32 %v2241_v24, %v603_v38 }
  0x75   : > { %1396 = vmatprep.subr.bf16.mxu1 %v2482_v17  ;;  %1513 = vmatprep.subr.bf16.mxu0 %v2482_v17  ;;  %v2268_v22 = vsub.f32 %v2000_v14, %v2504_v30  ;;  %v610_v57 = vand.u32 4294901760, %v2252_v47  ;;  %v617_v14 = vand.u32 4294901760, %v2257_v0  ;;  %v2289_v46 = vsub.f32 %v2075_v28, %v2114_v34 }
  0x76   : > { %298 = vperm.xlu0 %1635, %v289_v33   ;;  %v590_v15 = vsub.f32 %v2222_v45, %v589_v5  ;;  %v2273_v33 = vsub.f32 %v2003_v58, %v2505_v3  ;;  %v597_v40 = vsub.f32 %v2236_v54, %v596_v16  ;;  %v605_v29 = vand.u32 4294901760, %v604_v23  ;;  %v2509_v23 = vld [vmem:[#allocation4_spill] sm:$0xff] }
  0x77   : > { %v611_v10 = vsub.f32 %v2252_v47, %v610_v57  ;;  %v624_v19 = vand.u32 4294901760, %v2268_v22 }
  0x78   : > { %1398 = vmatpush1.bf16.msra.mxu1 %v1397_v35  ;;  %1515 = vmatpush1.bf16.msra.mxu0 %v1514_v49  ;;  %v570_v49 = vand.u32 4294901760, %v569_v41  ;;  %v584_v35 = vand.u32 4294901760, %v583_v1  ;;  %v591_v53 = vand.u32 4294901760, %v590_v15  ;;  %v618_v41 = vsub.f32 %v2257_v0, %v617_v14 }
  0x79   : > { %1399 = vmatprep.subr.bf16.mxu1 %v2482_v17  ;;  %1516 = vmatprep.subr.bf16.mxu0 %v2482_v17  ;;  %v631_v25 = vand.u32 4294901760, %v2273_v33  ;;  %v612_v50 = vand.u32 4294901760, %v611_v10  ;;  %v625_v1 = vsub.f32 %v2268_v22, %v624_v19 }
  0x7a   : > { %v1406_v42 = vpack.c.bf16 %v577_v63, %v570_v49  ;;  %v1409_v58 = vpack.c.bf16 %v591_v53, %v584_v35  ;;  %v619_v7 = vand.u32 4294901760, %v618_v41  ;;  %v2506_v35 = vmov 0.0  }
  0x7b   : > { %v632_v15 = vsub.f32 %v2273_v33, %v631_v25  ;;  %v626_v28 = vand.u32 4294901760, %v625_v1  ;;  %v1535_v63 = vpack.c.bf16 %v631_v25, %v624_v19  ;;  %v1421_v53 = vpack.c.bf16 %v1981_v39, %v1976_v8  ;;  %v2507_v8 = vld [vmem:[#allocation17_spill] sm:$0xff]  ;;  %v2508_v39 = vld [vmem:[#allocation18_spill] sm:$0xff] }
  0x7c   : > { %1401 = vmatpush1.bf16.msra.mxu1 %v1400_v4  ;;  %1518 = vmatpush1.bf16.msra.mxu0 %v1517_v51  ;;  %v1526_v4 = vpack.c.bf16 %v589_v5, %v582_v37  ;;  %v598_v51 = vand.u32 4294901760, %v597_v40  ;;  %v1529_v5 = vpack.c.bf16 %v603_v38, %v596_v16  ;;  %v638_v16 = vand.u32 4294901760, %v2289_v46 }
  0x7d   : > { %1402 = vmatprep.subr.bf16.mxu1 %v2482_v17  ;;  %1519 = vmatprep.subr.bf16.mxu0 %v2482_v17  ;;  %v633_v49 = vand.u32 4294901760, %v632_v15  ;;  %v1424_v40 = vpack.c.bf16 %v2021_v6, %v2016_v55  ;;  %v2511_v55 = vld [vmem:[#allocation5_spill] sm:$0xff]  ;;  %v1430_v6 = vpack.c.bf16 %v2085_v11, %v2061_v44  ;;  %v2514_v44 = vld [vmem:[#allocation8_spill] sm:$0xff]  ;;  %v1436_v11 = vpack.c.bf16 %v2140_v48, %v2135_v27  ;;  %v2517_v27 = vld [vmem:[#allocation11_spill] sm:$0xff] }
  0x7e   : > { %v1412_v37 = vpack.c.bf16 %v605_v29, %v598_v51  ;;  %v639_v30 = vsub.f32 %v2289_v46, %v638_v16  ;;  %v1442_v48 = vpack.c.bf16 %v2182_v56, %v2177_v13  ;;  %v1448_v13 = vpack.c.bf16 %v2222_v45, %v2217_v9  ;;  %v2519_v56 = vld [vmem:[#allocation13_spill] sm:$0xff]  ;;  %v2521_v45 = vld [vmem:[#allocation16_spill] sm:$0xff] }
  0x7f   : > { %v1418_v38 = vpack.c.bf16 %v633_v49, %v626_v28  ;;  %v1454_v9 = vpack.c.bf16 %v2257_v0, %v2252_v47  ;;  %v2523_v47 = vld [vmem:[#allocation14_spill] sm:$0xff]  ;;  %v2524_v0 = vld [vmem:[#allocation21_spill] sm:$0xff] }
  0x80   : > { %1404 = vmatpush1.bf16.msra.mxu1 %v1403_v52  ;;  %1521 = vmatpush1.bf16.msra.mxu0 %v1520_v12  ;;  %v1532_v52 = vpack.c.bf16 %v617_v14, %v610_v57  ;;  %v1415_v12 = vpack.c.bf16 %v619_v7, %v612_v50  ;;  %v640_v3 = vand.u32 4294901760, %v639_v30  ;;  %v1433_v57 = vpack.c.bf16 %v2109_v59, %v2099_v20  ;;  %v2516_v20 = vld [vmem:[#allocation10_spill] sm:$0xff] }
  0x81   : > { %1405 = vmatprep.subr.bf16.mxu1 %v2482_v17  ;;  %1522 = vmatprep.subr.bf16.mxu0 %v2482_v17  ;;  %v1439_v59 = vpack.c.bf16 %v2166_v31, %v2161_v62  ;;  %v1445_v62 = vpack.c.bf16 %v2198_v36, %v2193_v61  ;;  %v2518_v31 = vld [vmem:[#allocation12_spill] sm:$0xff]  ;;  %v1451_v61 = vpack.c.bf16 %v2241_v24, %v2236_v54  ;;  %v2520_v36 = vld [vmem:[#allocation15_spill] sm:$0xff] }
  0x82   : > { %v1457_v54 = vpack.c.bf16 %v2273_v33, %v2268_v22  ;;  %v2522_v24 = vld [vmem:[#allocation20_spill] sm:$0xff]  ;;  %v2526_v22 = vld [vmem:[#allocation23_spill] sm:$0xff] }
  0x83   : > { %v2527_v33 = vld [vmem:[#allocation24_spill] sm:$0xff] }
  0x84   : > { %1407 = vmatpush1.bf16.msra.mxu1 %v1406_v42  ;;  %1524 = vmatpush1.bf16.msra.mxu0 %v1523_v60  ;;  %v2513_v60 = vld [vmem:[#allocation6_spill] sm:$0xff] }
  0x85   : > { %1408 = vmatprep.subr.bf16.mxu1 %v2482_v17  ;;  %1525 = vmatprep.subr.bf16.mxu0 %v2482_v17 }
  0x88   : > { %1410 = vmatpush1.bf16.msra.mxu1 %v1409_v58  ;;  %1527 = vmatpush1.bf16.msra.mxu0 %v1526_v4 }
  0x89   : > { %1411 = vmatprep.subr.bf16.mxu1 %v2482_v17  ;;  %1528 = vmatprep.subr.bf16.mxu0 %v2482_v17 }
  0x8c   : > { %1413 = vmatpush1.bf16.msra.mxu1 %v1412_v37  ;;  %1530 = vmatpush1.bf16.msra.mxu0 %v1529_v5 }
  0x8d   : > { %1414 = vmatprep.subr.bf16.mxu1 %v2482_v17  ;;  %1531 = vmatprep.subr.bf16.mxu0 %v2482_v17 }
  0x90   : > { %1416 = vmatpush1.bf16.msra.mxu1 %v1415_v12  ;;  %1533 = vmatpush1.bf16.msra.mxu0 %v1532_v52 }
  0x91   : > { %1417 = vmatprep.subr.bf16.mxu1 %v2482_v17  ;;  %1534 = vmatprep.subr.bf16.mxu0 %v2482_v17 }
  0x94   : > { %1419 = vmatpush1.bf16.msra.mxu1 %v1418_v38  ;;  %1536 = vmatpush1.bf16.msra.mxu0 %v1535_v63 }
  0x95   : > { %635 = vmatprep.subr.mxu1 %v2506_v35  ;;  %1075 = vmatprep.subr.mxu0 %v2506_v35 }
  0x98   : > { %641 = vmatpush1.msra.mxu1 %v640_v3  ;;  %1079 = vmatpush1.msra.mxu0 %v638_v16 }
  0x99   : > { %1420 = vmatprep.subr.bf16.mxu1 %v2482_v17  ;;  %1537 = vmatprep.subr.bf16.mxu0 %v2482_v17 }
  0x9a   : > { %655 = vmatmul.mubr.f32.vlgmr.msra.gmra.mrb[0].mxu1 %v1954_v2  ;;  %1093 = vmatmul.mubr.f32.vlgmr.msra.gmra.mrb[0].mxu0 %v1954_v2 }
  0x9b   : > { %1422 = vmatpush1.bf16.msra.mxu1 %v1421_v53  ;;  %1539 = vmatpush1.bf16.msra.mxu0 %v1759_v18  ;;  %v2510_v18 = vld [vmem:[#allocation19_spill] sm:$0xff] }
  0x9c   : > { %1423 = vmatprep.subr.bf16.mxu1 %v2482_v17  ;;  %1540 = vmatprep.subr.bf16.mxu0 %v2482_v17  ;;  %v1427_v42 = vpack.c.bf16 %v2510_v18, %v2040_v26  ;;  %v2512_v26 = vld [vmem:[#allocation7_spill] sm:$0xff] }
  0x9d   : > { %660 = vmatprep.mubr.f32.mxu1 %v2507_v8  ;;  %1098 = vmatprep.mubr.f32.mxu0 %v2507_v8 }
  0x9e   : > { %662 = vmatmul.mubr.f32.gmra.mrb[2].mxu1 %v2508_v39  ;;  %1100 = vmatmul.mubr.f32.gmra.mrb[2].mxu0 %v2508_v39 }
  0x9f   : > { %1425 = vmatpush1.bf16.msra.mxu1 %v1424_v40  ;;  %1542 = vmatpush1.bf16.msra.mxu0 %v2509_v23 }
  0xa0   : > { %1426 = vmatprep.subr.bf16.mxu1 %v2482_v17  ;;  %1543 = vmatprep.subr.bf16.mxu0 %v2482_v17 }
  0xa1   : > { %667 = vmatprep.mubr.f32.mxu1 %v2116_v21  ;;  %1105 = vmatprep.mubr.f32.mxu0 %v2116_v21 }
  0xa2   : > { %669 = vmatmul.mubr.f32.gmra.mrb[4].mxu1 %v2080_v32  ;;  %1107 = vmatmul.mubr.f32.gmra.mrb[4].mxu0 %v2080_v32 }
  0xa3   : > { %1428 = vmatpush1.bf16.msra.mxu1 %v1427_v42  ;;  %1545 = vmatpush1.bf16.msra.mxu0 %v2511_v55 }
  0xa4   : > { %1429 = vmatprep.subr.bf16.mxu1 %v2482_v17  ;;  %1546 = vmatprep.subr.bf16.mxu0 %v2482_v17 }
  0xa5   : > { %794 = vmatprep.mubr.f32.mxu1 %v2512_v26  ;;  %1204 = vmatprep.mubr.f32.mxu0 %v1828_v43  ;;  %v2515_v43 = vld [vmem:[#allocation9_spill] sm:$0xff] }
  0xa7   : > { %1431 = vmatpush1.bf16.msra.mxu1 %v1430_v6  ;;  %1548 = vmatpush1.bf16.msra.mxu0 %v2513_v60 }
  0xa8   : > { %1432 = vmatprep.subr.bf16.mxu1 %v2482_v17  ;;  %1549 = vmatprep.subr.bf16.mxu0 %v2482_v17 }
  0xab   : > { %1434 = vmatpush1.bf16.msra.mxu1 %v1433_v57  ;;  %1551 = vmatpush1.bf16.msra.mxu0 %v2514_v44 }
  0xac   : > { %1435 = vmatprep.subr.bf16.mxu1 %v2482_v17  ;;  %1552 = vmatprep.subr.bf16.mxu0 %v2482_v17 }
  0xaf   : > { %1437 = vmatpush1.bf16.msra.mxu1 %v1436_v11  ;;  %1554 = vmatpush1.bf16.msra.mxu0 %v2515_v43 }
  0xb0   : > { %1438 = vmatprep.subr.bf16.mxu1 %v2482_v17  ;;  %1555 = vmatprep.subr.bf16.mxu0 %v2482_v17 }
  0xb3   : > { %1440 = vmatpush1.bf16.msra.mxu1 %v1439_v59  ;;  %1557 = vmatpush1.bf16.msra.mxu0 %v2516_v20 }
  0xb4   : > { %1441 = vmatprep.subr.bf16.mxu1 %v2482_v17  ;;  %1558 = vmatprep.subr.bf16.mxu0 %v2482_v17 }
  0xb7   : > { %1443 = vmatpush1.bf16.msra.mxu1 %v1442_v48  ;;  %1560 = vmatpush1.bf16.msra.mxu0 %v2517_v27 }
  0xb8   : > { %1444 = vmatprep.subr.bf16.mxu1 %v2482_v17  ;;  %1561 = vmatprep.subr.bf16.mxu0 %v2482_v17 }
  0xbb   : > { %1446 = vmatpush1.bf16.msra.mxu1 %v1445_v62  ;;  %1563 = vmatpush1.bf16.msra.mxu0 %v2518_v31 }
  0xbc   : > { %1447 = vmatprep.subr.bf16.mxu1 %v2482_v17  ;;  %1564 = vmatprep.subr.bf16.mxu0 %v2482_v17 }
  0xbf   : > { %1449 = vmatpush1.bf16.msra.mxu1 %v1448_v13  ;;  %1566 = vmatpush1.bf16.msra.mxu0 %v2519_v56 }
  0xc0   : > { %1450 = vmatprep.subr.bf16.mxu1 %v2482_v17  ;;  %1567 = vmatprep.subr.bf16.mxu0 %v2482_v17 }
  0xc3   : > { %1452 = vmatpush1.bf16.msra.mxu1 %v1451_v61  ;;  %1569 = vmatpush1.bf16.msra.mxu0 %v2520_v36 }
  0xc4   : > { %1453 = vmatprep.subr.bf16.mxu1 %v2482_v17  ;;  %1570 = vmatprep.subr.bf16.mxu0 %v2482_v17 }
  0xc7   : > { %1455 = vmatpush1.bf16.msra.mxu1 %v1454_v9  ;;  %1572 = vmatpush1.bf16.msra.mxu0 %v2521_v45 }
  0xc8   : > { %1456 = vmatprep.subr.bf16.mxu1 %v2482_v17  ;;  %1573 = vmatprep.subr.bf16.mxu0 %v2482_v17  ;;  %v2525_v17 = vld [vmem:[#allocation22_spill] sm:$0xff] }
  0xcb   : > { %1458 = vmatpush1.bf16.msra.mxu1 %v1457_v54  ;;  %1575 = vmatpush1.bf16.msra.mxu0 %v2522_v24 }
  0xcc   : > { %778 = vmatprep.subr.mxu1 %v2506_v35  ;;  %1190 = vmatprep.subr.mxu0 %v2506_v35 }
  0xcf   : > { %781 = vmatpush1.msra.mxu1 %v2289_v46  ;;  %1192 = vmatpush1.msra.mxu0 %v2114_v34 }
  0xd0   : > { %797 = vmatmul.mubr.f32.vlgmr.msra.gmra.mrb[0].mxu1 %v2523_v47  ;;  %1206 = vmatmul.mubr.f32.vlgmr.msra.gmra.mrb[0].mxu0 %v1954_v2 }
  0xd1   : > { %803 = vmatprep.mubr.f32.mxu1 %v2524_v0  ;;  %1211 = vmatprep.mubr.f32.mxu0 %v2507_v8 }
  0xd4   : > { %806 = vmatmul.mubr.f32.gmra.mrb[2].mxu1 %v2525_v17  ;;  %1213 = vmatmul.mubr.f32.gmra.mrb[2].mxu0 %v2508_v39 }
  0xd5   : > { %812 = vmatprep.mubr.f32.mxu1 %v2526_v22  ;;  %1218 = vmatprep.mubr.f32.mxu0 %v2116_v21 }
  0xd8   : > { %815 = vmatmul.mubr.f32.gmra.mrb[4].mxu1 %v2527_v33  ;;  %1220 = vmatmul.mubr.f32.gmra.mrb[4].mxu0 %v2080_v32 }
  0xf1   : > { %v294_v34 = vpop.permute.xlu0 %293  ;;  %v304_v21 = vpop.permute.xlu1 %303 }
  0xf5   : > { %v299_v29 = vpop.permute.xlu0 %298 }
 0x1a3   : > { %v798_v14 = vpop.f32.mrb[0].mxu1  ;;  %v1207_v2 = vpop.f32.mrb[0].mxu0 }
 0x1a4   : > { %v1576_v58 = vadd.f32 %v798_v14, %v294_v34  ;;  %v800_v4 = vpop.f32.mrb[1].mxu1  ;;  %v1209_v51 = vpop.f32.mrb[1].mxu0 }
 0x1a6   : > { %v1577_v10 = vadd.f32 %v1576_v58, %v1207_v2 }
 0x1a7   : > { %v807_v41 = vpop.f32.mrb[2].mxu1  ;;  %v1214_v19 = vpop.f32.mrb[2].mxu0 }
 0x1a8   : > { %1225 = vst [vmem:[%s206_s28] sm:$0xff] %v1577_v10  ;;  %v1578_v25 = vadd.f32 %v807_v41, %v299_v29  ;;  %v809_v46 = vpop.f32.mrb[3].mxu1  ;;  %v1216_v37 = vpop.f32.mrb[3].mxu0 }
 0x1aa   : > { %v1579_v5 = vadd.f32 %v1578_v25, %v1214_v19  ;;  %1234 = sbr.rel (!%p1714_p5) target bundleno = 441 (0x1b9), region = 74 }
 0x1ab   : > { %v816_v50 = vpop.f32.mrb[4].mxu1  ;;  %v1221_v7 = vpop.f32.mrb[4].mxu0 }
 0x1ac   : > { %1226 = vst [vmem:[%s206_s28 + $0x8] sm:$0xff] %v1579_v5  ;;  %v1580_v32 = vadd.f32 %v816_v50, %v304_v21  ;;  %v818_v1 = vpop.f32.mrb[5].mxu1  ;;  %v1223_v15 = vpop.f32.mrb[5].mxu0 }
 0x1ae   : > { %v1581_v52 = vadd.f32 %v1580_v32, %v1221_v7 }
 0x1af   : > { %v1268_v12 = vld [vmem:[%s206_s28] sm:$0xff] (%p1714_p5) }
 0x1b0   : > { %1227 = vst [vmem:[%s206_s28 + $0x10] sm:$0xff] %v1581_v52  ;;  %1269 = vst [vmem:[%s1236_s5] sm:$0xff] (%p1714_p5), %v1268_v12 }
 0x1b3   : > { %v1270_v28 = vld [vmem:[%s206_s28 + $0x8] sm:$0xff] }
 0x1b4   : > { %1271 = vst [vmem:[%s1236_s5 + $0x10] sm:$0xff] %v1270_v28 }
 0x1b7   : > { %v1272_v49 = vld [vmem:[%s206_s28 + $0x10] sm:$0xff] }
 0x1b8   : > { %1273 = vst [vmem:[%s1236_s5 + $0x20] sm:$0xff] %v1272_v49 }
 0x1b9 PF: > { %p10_p10 = scmp.ge.s32.totalorder %s1701_s16, 4   ;;  %s2528_s12 = smov %s1655_s13 }
 0x1ba   : > { %s2529_s13 = smov %s1712_s19  ;;  %s2530_s14 = smov %s1701_s16 }
 0x1bb   :  { %12 = sbr.rel (!%p10_p10) target bundleno = 2 (0x2), region = 143 }

</bundles_post_ra>
